<compile_context>
chip_gen: v7x
topology: tpu7x:2x2x1
jax: 0.10.0
libtpu: 0.0.40
codegen_flags: <defaults>
</compile_context>

<pallas_src>
import numpy as np
import jax
import jax.numpy as jnp
from jax.experimental import pallas as pl
from jax.experimental.pallas import tpu as pltpu


# ----------------------------- kernel -----------------------------

def _upconv_kernel(x_ref, a3_ref, bw_ref, bias_ref, o_ref):
    """Fused upsample + 3x3 conv for a block of B samples.

    Stage 1 (dominant, ONE MXU call): U = X2d @ [BW0|BW1|BW2], X2d = (B*H, WCp).
    Stage 2 (small, ~25% of FLOPs):  per sample, out = sum_dy A_dy @ U[:, dy-slice] + bias.
    """
    B, H, WCp = x_ref.shape
    Ho = o_ref.shape[1]
    WoOC = o_ref.shape[2]

    # Stage 1: width interp + conv width taps, all three height taps at once.
    x2d = x_ref[...].reshape(B * H, WCp)          # merges leading dims only -> free reshape
    u = jnp.dot(x2d, bw_ref[...], preferred_element_type=jnp.float32)   # (B*H, 3*WoOC) f32
    # TODO(synk): keep u in f32 (and a3 in f32) if tighter-than-bf16 accuracy is needed.
    u = u.astype(jnp.bfloat16)

    bias = bias_ref[...]                          # (1, WoOC) f32

    # Stage 2: height interp + conv row taps (K = H).  Per-sample loop is static (B small).
    # The dominant dy fusion already happened in stage 1; fusing dy here would need a
    # lane->sublane value reshape, skipped for lowering robustness.
    for n in range(B):
        un = u[n * H:(n + 1) * H, :]              # (H, 3*WoOC), static slice
        acc = jnp.dot(a3_ref[0], un[:, 0:WoOC],
                      preferred_element_type=jnp.float32)
        acc = acc + jnp.dot(a3_ref[1], un[:, WoOC:2 * WoOC],
                            preferred_element_type=jnp.float32)
        acc = acc + jnp.dot(a3_ref[2], un[:, 2 * WoOC:3 * WoOC],
                            preferred_element_type=jnp.float32)
        o_ref[n] = (acc + bias).astype(o_ref.dtype)


# ----------------------------- glue: matrix builders -----------------------------

def _interp_matrix(n_in, n_out):
    """Bilinear interpolation matrix, align_corners=True: src = i*(n_in-1)/(n_out-1)."""
    m = np.zeros((n_out, n_in), np.float32)
    if n_out == 1:
        m[0, 0] = 1.0
        return m
    for i in range(n_out):
        src = i * (n_in - 1) / (n_out - 1)
        lo = min(int(np.floor(src)), n_in - 1)
        hi = min(lo + 1, n_in - 1)
        f = src - lo
        m[i, lo] += 1.0 - f
        m[i, hi] += f
    return m


def _stacked_shifted_rows(a_mat):
    """Stack the three conv-height-tap views of A (1-row zero pad folded in) -> (3, Ho, H)."""
    Ho, H = a_mat.shape
    out = np.zeros((3, Ho, H), np.float32)
    for dy in range(3):
        for i in range(Ho):
            src = i + dy - 1
            if 0 <= src < Ho:
                out[dy, i] = a_mat[src]
    return out


def _expand_width_matrix(b_mat, C):
    """(Wo, W) interp matrix -> (W*C, Wo*C) acting on the flattened (w*C + c) lane axis."""
    Wo, W = b_mat.shape
    m = np.zeros((W * C, Wo * C), np.float32)
    for wo in range(Wo):
        for w in range(W):
            v = b_mat[wo, w]
            if v != 0.0:
                for c in range(C):
                    m[w * C + c, wo * C + c] = v
    return m


def _toeplitz_conv_weights_nopad(w_oihw, Wo):
    """(OC, C, 3, 3) -> (3, Wo*C, Wo*OC): per-height-tap width-Toeplitz matrices acting on
    the UNPADDED upsampled slab (the pad=1 edge columns are folded away as zeros)."""
    OC, C, KH, KW = w_oihw.shape
    m = np.zeros((KH, Wo * C, Wo * OC), np.float32)
    for dy in range(KH):
        for dx in range(KW):
            blk = w_oihw[:, :, dy, dx].T  # (C, OC)
            for x in range(Wo):
                src = x + dx - 1
                if 0 <= src < Wo:
                    m[dy, src * C:(src + 1) * C, x * OC:(x + 1) * OC] = blk
    return m


# ----------------------------- wrappers -----------------------------

def upconv_pallas_flat(x_flat, w_oihw, bias, scale=2, batch_block=None,
                       out_dtype=jnp.float32):
    """x_flat: (N, H, W*C) flattened-NHWC slab.  Returns lane-dense (N, Ho, Wo*OC)."""
    w_np = np.asarray(w_oihw, np.float32)
    OC, C, KH, _ = w_np.shape
    N, H, WC = x_flat.shape
    W = WC // C
    Ho, Wo = H * scale, W * scale
    WoOC = Wo * OC

    # Host-side folding (f32), then cast constants to bf16 for full-rate MXU.
    A3 = _stacked_shifted_rows(_interp_matrix(H, Ho))               # (3, Ho, H)
    Bexp = _expand_width_matrix(_interp_matrix(W, Wo), C)           # (W*C, Wo*C)
    Wmat = _toeplitz_conv_weights_nopad(w_np, Wo)                   # (3, Wo*C, Wo*OC)
    BW = np.einsum('ij,djk->dik', Bexp, Wmat)                       # (3, W*C, Wo*OC)
    # Concatenate the three dy slabs along the matmul-N axis -> single stage-1 MXU call.
    BWcat = np.transpose(BW, (1, 0, 2)).reshape(WC, KH * WoOC)      # (W*C, 3*Wo*OC)

    # Lane density: pad the contraction axis (flattened W*C) up to a multiple of 128.
    WCp = ((WC + 127) // 128) * 128
    if WCp != WC:
        BWcat = np.pad(BWcat, ((0, WCp - WC), (0, 0)))

    # Batch block: target M = batch_block*H ~256 rows (full v6e/v7x MXU fill; v5e saturates
    # earlier at 128).  On v7x prefer a batch_block leaving >=2 grid steps so both TCs get work.
    if batch_block is None:
        batch_block = max(1, min(N, 256 // max(H, 1)))
    Bb = int(batch_block)
    G = -(-N // Bb)                  # cdiv
    Npad = G * Bb

    a3 = jnp.asarray(A3, jnp.bfloat16)
    bw = jnp.asarray(BWcat, jnp.bfloat16)
    bias_flat = jnp.tile(jnp.asarray(bias, jnp.float32), Wo).reshape(1, WoOC)

    x_bf = x_flat.astype(jnp.bfloat16)
    pad_n, pad_c = Npad - N, WCp - WC
    if pad_n or pad_c:
        x_bf = jnp.pad(x_bf, ((0, pad_n), (0, 0), (0, pad_c)))

    out_isz = np.dtype(out_dtype).itemsize
    flops = 2 * Npad * (H * WCp * KH * WoOC + KH * Ho * H * WoOC)
    bytes_accessed = (Npad * H * WCp * 2 + Npad * Ho * WoOC * out_isz
                      + WCp * KH * WoOC * 2 + KH * Ho * H * 2 + WoOC * 4)

    out = pl.pallas_call(
        _upconv_kernel,
        out_shape=jax.ShapeDtypeStruct((Npad, Ho, WoOC), out_dtype),
        grid_spec=pltpu.PrefetchScalarGridSpec(
            num_scalar_prefetch=0,
            grid=(G,),
            in_specs=[
                pl.BlockSpec((Bb, H, WCp), lambda g: (g, 0, 0)),
                # Grid-invariant operands: constant index_maps -> fetched once, reused.
                pl.BlockSpec((KH, Ho, H), lambda g: (0, 0, 0)),
                pl.BlockSpec((WCp, KH * WoOC), lambda g: (0, 0)),
                pl.BlockSpec((1, WoOC), lambda g: (0, 0)),
            ],
            out_specs=pl.BlockSpec((Bb, Ho, WoOC), lambda g: (g, 0, 0)),
        ),
        # Samples are independent -> parallel batch axis (shards across v7x's 2 TCs when G>=2).
        compiler_params=pltpu.CompilerParams(
            dimension_semantics=("parallel",),
            vmem_limit_bytes=32 * 1024 * 1024),
        cost_estimate=pl.CostEstimate(flops=int(flops), transcendentals=0,
                                      bytes_accessed=int(bytes_accessed)),
    )(x_bf, a3, bw, bias_flat)

    return out[:N] if Npad != N else out


def upconv_pallas(x_nchw, w_oihw, bias, scale=2, batch_block=None, out_dtype=jnp.float32):
    """NCHW in / NCHW out convenience wrapper (matches the PyTorch module)."""
    N, C, H, W = x_nchw.shape
    OC = w_oihw.shape[0]
    Ho, Wo = H * scale, W * scale
    # NCHW -> flattened-NHWC slab.  (If the surrounding model is NHWC, call
    # upconv_pallas_flat directly and skip both layout passes.)
    x_flat = jnp.transpose(x_nchw, (0, 2, 3, 1)).reshape(N, H, W * C)
    out_flat = upconv_pallas_flat(x_flat, w_oihw, bias, scale=scale,
                                  batch_block=batch_block, out_dtype=out_dtype)
    return out_flat.reshape(N, Ho, Wo, OC).transpose(0, 3, 1, 2)


def upconv_reference(x_nchw, w_oihw, bias, scale=2):
    """Plain-JAX reference (same math, for sanity check)."""
    N, C, H, W = x_nchw.shape
    Ho, Wo = H * scale, W * scale
    A = jnp.asarray(_interp_matrix(H, Ho))
    B = jnp.asarray(_interp_matrix(W, Wo))
    up = jnp.einsum('nchw,Hh,Ww->ncHW', x_nchw, A, B,
                    precision=jax.lax.Precision.HIGHEST)
    out = jax.lax.conv_general_dilated(
        up, w_oihw, window_strides=(1, 1), padding=((1, 1), (1, 1)),
        dimension_numbers=('NCHW', 'OIHW', 'NCHW'),
        precision=jax.lax.Precision.HIGHEST)
    return out + bias[None, :, None, None]


if __name__ == "__main__":
    inc, outc, scale = 4, 8, 2
    N, H, W = 2, 16, 16

    key = jax.random.PRNGKey(0)
    kx, kw, kb = jax.random.split(key, 3)
    x = jax.random.normal(kx, (N, inc, H, W), jnp.float32)

    # Deterministic Conv2d(inc, outc, 3) params (PyTorch-default uniform(-k, k), k=1/sqrt(fan_in))
    fan_in = inc * 3 * 3
    bound = 1.0 / np.sqrt(fan_in)
    w = jax.random.uniform(kw, (outc, inc, 3, 3), jnp.float32, -bound, bound)
    b = jax.random.uniform(kb, (outc,), jnp.float32, -bound, bound)

    out = upconv_pallas(x, w, b, scale=scale)
    out = jax.block_until_ready(out)

    ref = upconv_reference(x, w, b, scale=scale)
    assert out.shape == (N, outc, H * scale, W * scale)
    # Tolerance consistent with bf16 operands / f32 accumulation inside the kernel.
    np.testing.assert_allclose(np.asarray(out), np.asarray(ref), rtol=2e-2, atol=2e-2)
    print("KERNEL_OK")
</pallas_src>

<mosaic_0001>
module attributes {stable_mosaic.version = 11 : i64} {
  func.func @_upconv_kernel(%arg0: i32, %arg1: memref<2x16x128xbf16, #tpu.memory_space<vmem>>, %arg2: memref<3x32x16xbf16, #tpu.memory_space<vmem>>, %arg3: memref<128x768xbf16, #tpu.memory_space<vmem>>, %arg4: memref<1x256xf32, #tpu.memory_space<vmem>>, %arg5: memref<2x32x256xf32, #tpu.memory_space<vmem>>) attributes {dimension_semantics = [#tpu.dimension_semantics<parallel>], iteration_bounds = array<i64: 1>, scalar_prefetch = 0 : i64, scratch_operands = 0 : i64, tpu.core_type = #tpu.core_type<tc>, window_params = [{transform_indices = @transform_0, window_bounds = array<i64: 2, 16, 128>}, {pipeline_mode = #tpu.pipeline_mode<synchronous>, transform_indices = @transform_1, window_bounds = array<i64: 3, 32, 16>}, {pipeline_mode = #tpu.pipeline_mode<synchronous>, transform_indices = @transform_2, window_bounds = array<i64: 128, 768>}, {pipeline_mode = #tpu.pipeline_mode<synchronous>, transform_indices = @transform_3, window_bounds = array<i64: 1, 256>}, {transform_indices = @transform_4, window_bounds = array<i64: 2, 32, 256>}]} {
    %c0 = arith.constant 0 : index
    %c0_0 = arith.constant 0 : index
    %c0_1 = arith.constant 0 : index
    %0 = vector.load %arg1[%c0, %c0_0, %c0_1] : memref<2x16x128xbf16, #tpu.memory_space<vmem>>, vector<2x16x128xbf16>
    %1 = vector.shape_cast %0 : vector<2x16x128xbf16> to vector<32x128xbf16>
    %c0_2 = arith.constant 0 : index
    %c0_3 = arith.constant 0 : index
    %2 = vector.load %arg3[%c0_2, %c0_3] : memref<128x768xbf16, #tpu.memory_space<vmem>>, vector<128x768xbf16>
    %cst = arith.constant dense<0.000000e+00> : vector<32x768xf32>
    %3 = tpu.matmul %1, %2, %cst {dimension_numbers = #tpu.dot_dimension_numbers<[1], [0], [0], [1], [0, 0, 1, 1], [], []>} : vector<32x128xbf16>, vector<128x768xbf16>, vector<32x768xf32> -> vector<32x768xf32>
    %4 = arith.truncf %3 : vector<32x768xf32> to vector<32x768xbf16>
    %c0_4 = arith.constant 0 : index
    %c0_5 = arith.constant 0 : index
    %5 = vector.load %arg4[%c0_4, %c0_5] : memref<1x256xf32, #tpu.memory_space<vmem>>, vector<1x256xf32>
    %6 = vector.extract_strided_slice %4 {offsets = [0, 0], sizes = [16, 768], strides = [1, 1]} : vector<32x768xbf16> to vector<16x768xbf16>
    %c0_6 = arith.constant 0 : index
    %c0_7 = arith.constant 0 : index
    %c0_8 = arith.constant 0 : index
    %7 = vector.load %arg2[%c0_6, %c0_7, %c0_8] : memref<3x32x16xbf16, #tpu.memory_space<vmem>>, vector<1x32x16xbf16>
    %8 = vector.shape_cast %7 : vector<1x32x16xbf16> to vector<32x16xbf16>
    %9 = vector.extract_strided_slice %6 {offsets = [0, 0], sizes = [16, 256], strides = [1, 1]} : vector<16x768xbf16> to vector<16x256xbf16>
    %cst_9 = arith.constant dense<0.000000e+00> : vector<32x256xf32>
    %10 = tpu.matmul %8, %9, %cst_9 {dimension_numbers = #tpu.dot_dimension_numbers<[1], [0], [0], [1], [0, 0, 1, 1], [], []>} : vector<32x16xbf16>, vector<16x256xbf16>, vector<32x256xf32> -> vector<32x256xf32>
    %c1 = arith.constant 1 : index
    %c0_10 = arith.constant 0 : index
    %c0_11 = arith.constant 0 : index
    %11 = vector.load %arg2[%c1, %c0_10, %c0_11] : memref<3x32x16xbf16, #tpu.memory_space<vmem>>, vector<1x32x16xbf16>
    %12 = vector.shape_cast %11 : vector<1x32x16xbf16> to vector<32x16xbf16>
    %13 = vector.extract_strided_slice %6 {offsets = [0, 256], sizes = [16, 256], strides = [1, 1]} : vector<16x768xbf16> to vector<16x256xbf16>
    %cst_12 = arith.constant dense<0.000000e+00> : vector<32x256xf32>
    %14 = tpu.matmul %12, %13, %cst_12 {dimension_numbers = #tpu.dot_dimension_numbers<[1], [0], [0], [1], [0, 0, 1, 1], [], []>} : vector<32x16xbf16>, vector<16x256xbf16>, vector<32x256xf32> -> vector<32x256xf32>
    %15 = arith.addf %10, %14 : vector<32x256xf32>
    %c2 = arith.constant 2 : index
    %c0_13 = arith.constant 0 : index
    %c0_14 = arith.constant 0 : index
    %16 = vector.load %arg2[%c2, %c0_13, %c0_14] : memref<3x32x16xbf16, #tpu.memory_space<vmem>>, vector<1x32x16xbf16>
    %17 = vector.shape_cast %16 : vector<1x32x16xbf16> to vector<32x16xbf16>
    %18 = vector.extract_strided_slice %6 {offsets = [0, 512], sizes = [16, 256], strides = [1, 1]} : vector<16x768xbf16> to vector<16x256xbf16>
    %cst_15 = arith.constant dense<0.000000e+00> : vector<32x256xf32>
    %19 = tpu.matmul %17, %18, %cst_15 {dimension_numbers = #tpu.dot_dimension_numbers<[1], [0], [0], [1], [0, 0, 1, 1], [], []>} : vector<32x16xbf16>, vector<16x256xbf16>, vector<32x256xf32> -> vector<32x256xf32>
    %20 = arith.addf %15, %19 : vector<32x256xf32>
    %21 = vector.broadcast %5 : vector<1x256xf32> to vector<32x256xf32>
    %22 = arith.addf %20, %21 : vector<32x256xf32>
    %c0_16 = arith.constant 0 : index
    %c0_17 = arith.constant 0 : index
    %c0_18 = arith.constant 0 : index
    %23 = vector.load %arg5[%c0_16, %c0_17, %c0_18] : memref<2x32x256xf32, #tpu.memory_space<vmem>>, vector<1x32x256xf32>
    %24 = vector.shape_cast %23 : vector<1x32x256xf32> to vector<32x256xf32>
    %25 = vector.shape_cast %22 : vector<32x256xf32> to vector<1x32x256xf32>
    tpu.vector_store %arg5[%c0_16, %c0_17, %c0_18], %25 {strides = array<i32>} : memref<2x32x256xf32, #tpu.memory_space<vmem>>, vector<1x32x256xf32>,
    %26 = vector.extract_strided_slice %4 {offsets = [16, 0], sizes = [16, 768], strides = [1, 1]} : vector<32x768xbf16> to vector<16x768xbf16>
    %c0_19 = arith.constant 0 : index
    %c0_20 = arith.constant 0 : index
    %c0_21 = arith.constant 0 : index
    %27 = vector.load %arg2[%c0_19, %c0_20, %c0_21] : memref<3x32x16xbf16, #tpu.memory_space<vmem>>, vector<1x32x16xbf16>
    %28 = vector.shape_cast %27 : vector<1x32x16xbf16> to vector<32x16xbf16>
    %29 = vector.extract_strided_slice %26 {offsets = [0, 0], sizes = [16, 256], strides = [1, 1]} : vector<16x768xbf16> to vector<16x256xbf16>
    %cst_22 = arith.constant dense<0.000000e+00> : vector<32x256xf32>
    %30 = tpu.matmul %28, %29, %cst_22 {dimension_numbers = #tpu.dot_dimension_numbers<[1], [0], [0], [1], [0, 0, 1, 1], [], []>} : vector<32x16xbf16>, vector<16x256xbf16>, vector<32x256xf32> -> vector<32x256xf32>
    %c1_23 = arith.constant 1 : index
    %c0_24 = arith.constant 0 : index
    %c0_25 = arith.constant 0 : index
    %31 = vector.load %arg2[%c1_23, %c0_24, %c0_25] : memref<3x32x16xbf16, #tpu.memory_space<vmem>>, vector<1x32x16xbf16>
    %32 = vector.shape_cast %31 : vector<1x32x16xbf16> to vector<32x16xbf16>
    %33 = vector.extract_strided_slice %26 {offsets = [0, 256], sizes = [16, 256], strides = [1, 1]} : vector<16x768xbf16> to vector<16x256xbf16>
    %cst_26 = arith.constant dense<0.000000e+00> : vector<32x256xf32>
    %34 = tpu.matmul %32, %33, %cst_26 {dimension_numbers = #tpu.dot_dimension_numbers<[1], [0], [0], [1], [0, 0, 1, 1], [], []>} : vector<32x16xbf16>, vector<16x256xbf16>, vector<32x256xf32> -> vector<32x256xf32>
    %35 = arith.addf %30, %34 : vector<32x256xf32>
    %c2_27 = arith.constant 2 : index
    %c0_28 = arith.constant 0 : index
    %c0_29 = arith.constant 0 : index
    %36 = vector.load %arg2[%c2_27, %c0_28, %c0_29] : memref<3x32x16xbf16, #tpu.memory_space<vmem>>, vector<1x32x16xbf16>
    %37 = vector.shape_cast %36 : vector<1x32x16xbf16> to vector<32x16xbf16>
    %38 = vector.extract_strided_slice %26 {offsets = [0, 512], sizes = [16, 256], strides = [1, 1]} : vector<16x768xbf16> to vector<16x256xbf16>
    %cst_30 = arith.constant dense<0.000000e+00> : vector<32x256xf32>
    %39 = tpu.matmul %37, %38, %cst_30 {dimension_numbers = #tpu.dot_dimension_numbers<[1], [0], [0], [1], [0, 0, 1, 1], [], []>} : vector<32x16xbf16>, vector<16x256xbf16>, vector<32x256xf32> -> vector<32x256xf32>
    %40 = arith.addf %35, %39 : vector<32x256xf32>
    %41 = vector.broadcast %5 : vector<1x256xf32> to vector<32x256xf32>
    %42 = arith.addf %40, %41 : vector<32x256xf32>
    %c1_31 = arith.constant 1 : index
    %c0_32 = arith.constant 0 : index
    %c0_33 = arith.constant 0 : index
    %43 = vector.load %arg5[%c1_31, %c0_32, %c0_33] : memref<2x32x256xf32, #tpu.memory_space<vmem>>, vector<1x32x256xf32>
    %44 = vector.shape_cast %43 : vector<1x32x256xf32> to vector<32x256xf32>
    %45 = vector.shape_cast %42 : vector<32x256xf32> to vector<1x32x256xf32>
    tpu.vector_store %arg5[%c1_31, %c0_32, %c0_33], %45 {strides = array<i32>} : memref<2x32x256xf32, #tpu.memory_space<vmem>>, vector<1x32x256xf32>,
    return
  }
  func.func @transform_0(%arg0: i32) -> (i32, i32, i32) {
    %c0_i32 = arith.constant 0 : i32
    %c0_i32_0 = arith.constant 0 : i32
    %c0_i32_1 = arith.constant 0 : i32
    return %arg0, %c0_i32, %c0_i32_0 : i32, i32, i32
  }
  func.func @transform_1(%arg0: i32) -> (i32, i32, i32) {
    %c0_i32 = arith.constant 0 : i32
    %c0_i32_0 = arith.constant 0 : i32
    %c0_i32_1 = arith.constant 0 : i32
    %c0_i32_2 = arith.constant 0 : i32
    return %c0_i32, %c0_i32_0, %c0_i32_1 : i32, i32, i32
  }
  func.func @transform_2(%arg0: i32) -> (i32, i32) {
    %c0_i32 = arith.constant 0 : i32
    %c0_i32_0 = arith.constant 0 : i32
    %c0_i32_1 = arith.constant 0 : i32
    return %c0_i32, %c0_i32_0 : i32, i32
  }
  func.func @transform_3(%arg0: i32) -> (i32, i32) {
    %c0_i32 = arith.constant 0 : i32
    %c0_i32_0 = arith.constant 0 : i32
    %c0_i32_1 = arith.constant 0 : i32
    return %c0_i32, %c0_i32_0 : i32, i32
  }
  func.func @transform_4(%arg0: i32) -> (i32, i32, i32) {
    %c0_i32 = arith.constant 0 : i32
    %c0_i32_0 = arith.constant 0 : i32
    %c0_i32_1 = arith.constant 0 : i32
    return %arg0, %c0_i32, %c0_i32_0 : i32, i32, i32
  }
}

</mosaic_0001>

<bundles_post_ra>
// kernel: tpu_custom_call.1
= control target key start
LH: loop header
LB: loop body
LE: loop exit
PB: predicated region body
PF: predicated region fallthrough
CT: control target
= control target key end

     0   :  { %9 = vsyncpa [#allocation3], 0  ;;  %s1441_s0 = inlined_call_operand.vmem [shape: bf16[2,16,128], index: 0, kind: input, shape index: {}]   ;;  %s1442_s1 = inlined_call_operand.vmem [shape: bf16[3,32,16], index: 1, kind: input, shape index: {}]   ;;  %s1443_s2 = inlined_call_operand.hbm [shape: bf16[128,768], index: 2, kind: input, shape index: {}]   ;;  %s1444_s3 = inlined_call_operand.vmem [shape: f32[1,256], index: 3, kind: input, shape index: {}]   ;;  %s1445_s4 = inlined_call_operand.hbm [shape: f32[2,32,256], index: 4, kind: output, shape index: {}]  }
   0x1   :  { %10 = vsyncpa [#allocation4], 0  ;;  %s1290_s15 = smov [#allocation2]   ;;  %s1242_s19 = scalar_lea.hbm %s1443_s2, 6144 }
   0x2   :  { %s20_s16 = sshll.u32 %s1290_s15, 4  ;;  %p1243_p0 = scmp.ne.s32.totalorder %s1443_s2, %s1242_s19  ;;  %s21_s16 = int_to_ptr.vmem [resolvable:$true] %s20_s16 }
   0x3   :  { %p1246_p1 = scmp.lt.u32.totalorder %s1242_s19, %s1443_s2 }
   0x5   :  { %p1248_p2 = pnand %p1246_p1, %p1243_p0 }
   0x7   :  { %1251 = shalt.err (!%p1248_p2)
}
   0x8   :  { %s1252_s24 = scalar_lea.vmem %s21_s16, 6144  ;;  %p1257_p4 = scmp.lt.s32.totalorder %s21_s16, %s21_s16 }
   0x9   :  { %p1253_p3 = scmp.ne.s32.totalorder %s21_s16, %s1252_s24  ;;  %p1258_p5 = scmp.lt.s32.totalorder %s1252_s24, %s1252_s24 }
   0xb   :  { %p1259_p6 = por %p1258_p5, %p1257_p4 }
   0xd   :  { %p1260_p7 = pnand %p1259_p6, %p1253_p3 }
   0xf   :  { %1263 = shalt.err (!%p1260_p7)
}
  0x10   :  { %s1291_s25 = smov 384   ;;  %s1292_s26 = smov 24  }
  0x11   :  { %26 = dma.hbm_to_vmem [thread:$0]  %s1443_s2, 6144, %s21_s16, [#allocation3], %s1291_s25, %s1291_s25, %s1292_s26  }
  0x12   :  { %1286 = dma.done.wait [#allocation3], 6144  }
  0x13   :  { %1287 = vsyncadd [#allocation3], 4294961152  ;;  %v1293_v0 = vmov 0   ;;  %v1156_v1 = vld [vmem:[#allocation2 + $0x4] ss:$24 sps:$4 sm:$0xff]   ;;  %v1220_v39 = vld [vmem:[%s1441_s0 + $0x8] sm:$0xff]  }
  0x14   :  { %369 = vmatprep.mubr.bf16.mxu0 %v1293_v0  ;;  %422 = vmatprep.mubr.bf16.mxu1 %v1293_v0  ;;  %v1158_v2 = vld [vmem:[#allocation2 + $0xc] ss:$24 sps:$4 sm:$0xff]   ;;  %v1160_v3 = vld [vmem:[#allocation2] ss:$24 sps:$4 sm:$0xff]   ;;  %v1164_v6 = vld [vmem:[#allocation2 + $0x3c] ss:$24 sps:$4 sm:$0xff]  }
  0x15   :  { %337 = vmatprep.subr.bf16.mxu0 %v1156_v1  ;;  %v1161_v4 = vld [vmem:[#allocation2 + $0x8] ss:$24 sps:$4 sm:$0xff]   ;;  %390 = vmatprep.subr.bf16.mxu1 %v1158_v2  ;;  %v1162_v5 = vld [vmem:[#allocation2 + $0x34] ss:$24 sps:$4 sm:$0xff]   ;;  %v1167_v8 = vld [vmem:[#allocation2 + $0x38] ss:$24 sps:$4 sm:$0xff]  }
  0x16   :  { %338 = vmatpush1.bf16.msra.mxu0 %v1160_v3  ;;  %391 = vmatpush1.bf16.msra.mxu1 %v1161_v4  ;;  %v1166_v7 = vld [vmem:[#allocation2 + $0x30] ss:$24 sps:$4 sm:$0xff]   ;;  %v1168_v9 = vld [vmem:[#allocation2 + $0x64] ss:$24 sps:$4 sm:$0xff]   ;;  %v1172_v11 = vld [vmem:[#allocation2 + $0x60] ss:$24 sps:$4 sm:$0xff]  }
  0x17   :  { %339 = vmatprep.subr.bf16.mxu0 %v1162_v5  ;;  %392 = vmatprep.subr.bf16.mxu1 %v1164_v6  ;;  %v1170_v10 = vld [vmem:[#allocation2 + $0x6c] ss:$24 sps:$4 sm:$0xff]   ;;  %v1173_v12 = vld [vmem:[#allocation2 + $0x68] ss:$24 sps:$4 sm:$0xff]   ;;  %v1176_v14 = vld [vmem:[#allocation2 + $0x9c] ss:$24 sps:$4 sm:$0xff]  }
  0x18   :  { %v1174_v13 = vld [vmem:[#allocation2 + $0x94] ss:$24 sps:$4 sm:$0xff]   ;;  %v1178_v15 = vld [vmem:[#allocation2 + $0x90] ss:$24 sps:$4 sm:$0xff]   ;;  %v1180_v17 = vld [vmem:[#allocation2 + $0xc4] ss:$24 sps:$4 sm:$0xff]  }
  0x19   :  { %v1179_v16 = vld [vmem:[#allocation2 + $0x98] ss:$24 sps:$4 sm:$0xff]   ;;  %v1182_v18 = vld [vmem:[#allocation2 + $0xcc] ss:$24 sps:$4 sm:$0xff]   ;;  %v1185_v20 = vld [vmem:[#allocation2 + $0xc8] ss:$24 sps:$4 sm:$0xff]  }
  0x1a   :  { %340 = vmatpush1.bf16.msra.mxu0 %v1166_v7  ;;  %393 = vmatpush1.bf16.msra.mxu1 %v1167_v8  ;;  %v1184_v19 = vld [vmem:[#allocation2 + $0xc0] ss:$24 sps:$4 sm:$0xff]   ;;  %v1186_v21 = vld [vmem:[#allocation2 + $0xf4] ss:$24 sps:$4 sm:$0xff]   ;;  %v1190_v23 = vld [vmem:[#allocation2 + $0xf0] ss:$24 sps:$4 sm:$0xff]  }
  0x1b   :  { %341 = vmatprep.subr.bf16.mxu0 %v1168_v9  ;;  %394 = vmatprep.subr.bf16.mxu1 %v1170_v10  ;;  %v1188_v22 = vld [vmem:[#allocation2 + $0xfc] ss:$24 sps:$4 sm:$0xff]   ;;  %v1191_v24 = vld [vmem:[#allocation2 + $0xf8] ss:$24 sps:$4 sm:$0xff]   ;;  %v1194_v26 = vld [vmem:[#allocation2 + $0x12c] ss:$24 sps:$4 sm:$0xff]  }
  0x1c   :  { %v1192_v25 = vld [vmem:[#allocation2 + $0x124] ss:$24 sps:$4 sm:$0xff]   ;;  %v1196_v27 = vld [vmem:[#allocation2 + $0x120] ss:$24 sps:$4 sm:$0xff]   ;;  %v1198_v29 = vld [vmem:[#allocation2 + $0x154] ss:$24 sps:$4 sm:$0xff]  }
  0x1d   :  { %v1197_v28 = vld [vmem:[#allocation2 + $0x128] ss:$24 sps:$4 sm:$0xff]   ;;  %v1200_v30 = vld [vmem:[#allocation2 + $0x15c] ss:$24 sps:$4 sm:$0xff]   ;;  %v1203_v32 = vld [vmem:[#allocation2 + $0x158] ss:$24 sps:$4 sm:$0xff]  }
  0x1e   :  { %342 = vmatpush1.bf16.msra.mxu0 %v1172_v11  ;;  %395 = vmatpush1.bf16.msra.mxu1 %v1173_v12  ;;  %v1202_v31 = vld [vmem:[#allocation2 + $0x150] ss:$24 sps:$4 sm:$0xff]   ;;  %v1207_v33 = vld [vmem:[#allocation2 + $0x14] ss:$24 sps:$4 sm:$0xff]   ;;  %v1204_v34 = vld [vmem:[%s1441_s0] sm:$0xff]   ;;  %vm528_vm0 = vcmask 130048  }
  0x1f   :  { %343 = vmatprep.subr.bf16.mxu0 %v1174_v13  ;;  %396 = vmatprep.subr.bf16.mxu1 %v1176_v14  ;;  %v1205_v35 = vld [vmem:[#allocation2 + $0x10] ss:$24 sps:$4 sm:$0xff]   ;;  %v1210_v36 = vld [vmem:[#allocation2 + $0x44] ss:$24 sps:$4 sm:$0xff]   ;;  %v1208_v37 = vld [vmem:[#allocation2 + $0x40] ss:$24 sps:$4 sm:$0xff]  }
  0x20   :  { %v1213_v38 = vld [vmem:[#allocation2 + $0x74] ss:$24 sps:$4 sm:$0xff]   ;;  %v1211_v40 = vld [vmem:[#allocation2 + $0x70] ss:$24 sps:$4 sm:$0xff]   ;;  %v1216_v41 = vld [vmem:[#allocation2 + $0xa4] ss:$24 sps:$4 sm:$0xff]  }
  0x21   :  { %v1214_v42 = vld [vmem:[#allocation2 + $0xa0] ss:$24 sps:$4 sm:$0xff]   ;;  %v1219_v43 = vld [vmem:[#allocation2 + $0xd4] ss:$24 sps:$4 sm:$0xff]   ;;  %v1217_v44 = vld [vmem:[#allocation2 + $0xd0] ss:$24 sps:$4 sm:$0xff]  }
  0x22   :  { %344 = vmatpush1.bf16.msra.mxu0 %v1178_v15  ;;  %397 = vmatpush1.bf16.msra.mxu1 %v1179_v16  ;;  %v1223_v45 = vld [vmem:[#allocation2 + $0x104] ss:$24 sps:$4 sm:$0xff]   ;;  %v1221_v46 = vld [vmem:[#allocation2 + $0x100] ss:$24 sps:$4 sm:$0xff]   ;;  %v1226_v47 = vld [vmem:[#allocation2 + $0x134] ss:$24 sps:$4 sm:$0xff]  }
  0x23   :  { %345 = vmatprep.subr.bf16.mxu0 %v1180_v17  ;;  %398 = vmatprep.subr.bf16.mxu1 %v1182_v18  ;;  %v1224_v48 = vld [vmem:[#allocation2 + $0x130] ss:$24 sps:$4 sm:$0xff]   ;;  %v1229_v49 = vld [vmem:[#allocation2 + $0x164] ss:$24 sps:$4 sm:$0xff]   ;;  %v1227_v50 = vld [vmem:[#allocation2 + $0x160] ss:$24 sps:$4 sm:$0xff]  }
  0x24   :  { %v1230_v63 = vld [vmem:[%s1442_s1 + $0x10] sm:$0xff]   ;;  %v1231_v13 = vld [vmem:[%s1442_s1 + $0x18] sm:$0xff]   ;;  %v1234_v14 = vld [vmem:[%s1442_s1] sm:$0xff]  }
  0x25   :  { %v1232_v15 = vld [vmem:[%s1442_s1] sm:$0xff]   ;;  %v1236_v16 = vld [vmem:[%s1442_s1 + $0x8] sm:$0xff]  }
  0x26   :  { %346 = vmatpush1.bf16.msra.mxu0 %v1184_v19  ;;  %399 = vmatpush1.bf16.msra.mxu1 %v1185_v20  ;;  %v1233_v17 = vld [vmem:[%s1442_s1 + $0x8] sm:$0xff]  }
  0x27   :  { %347 = vmatprep.subr.bf16.mxu0 %v1186_v21  ;;  %400 = vmatprep.subr.bf16.mxu1 %v1188_v22 }
  0x2a   :  { %348 = vmatpush1.bf16.msra.mxu0 %v1190_v23  ;;  %401 = vmatpush1.bf16.msra.mxu1 %v1191_v24  ;;  %v1235_v24 = vld [vmem:[%s1442_s1 + $0x20] sm:$0xff]  }
  0x2b   :  { %349 = vmatprep.subr.bf16.mxu0 %v1192_v25  ;;  %402 = vmatprep.subr.bf16.mxu1 %v1194_v26 }
  0x2e   :  { %350 = vmatpush1.bf16.msra.mxu0 %v1196_v27  ;;  %403 = vmatpush1.bf16.msra.mxu1 %v1197_v28 }
  0x2f   :  { %351 = vmatprep.subr.bf16.mxu0 %v1198_v29  ;;  %404 = vmatprep.subr.bf16.mxu1 %v1200_v30 }
  0x32   :  { %352 = vmatpush1.bf16.msra.mxu0 %v1202_v31  ;;  %405 = vmatpush1.bf16.msra.mxu1 %v1203_v32  ;;  %v1237_v31 = vld [vmem:[%s1442_s1 + $0x28] sm:$0xff]   ;;  %v1238_v32 = vld [vmem:[%s1442_s1 + $0x20] sm:$0xff]  }
  0x33   :  { %443 = vmatprep.subr.bf16.mxu0 %v1207_v33  ;;  %v1239_v33 = vld [vmem:[%s1442_s1 + $0x10] sm:$0xff]  }
  0x35   :  { %370 = vmatmul.mubr.bf16.vlgmr.msra.gmra.mrb[0].mxu0 %v1204_v34  ;;  %423 = vmatmul.mubr.bf16.vlgmr.msra.gmra.mrb[0].mxu1 %v1204_v34 }
  0x36   :  { %444 = vmatpush1.bf16.msra.mxu0 %v1205_v35  ;;  %379 = vmatprep.mubr.bf16.mxu0 %v1293_v0  ;;  %v1241_v35 = vld [vmem:[%s1442_s1 + $0x18] sm:$0xff]  }
  0x37   :  { %445 = vmatprep.subr.bf16.mxu0 %v1210_v36  ;;  %432 = vmatprep.mubr.bf16.mxu1 %v1293_v0  ;;  %v740_v36 = vlaneseq }
  0x3a   :  { %446 = vmatpush1.bf16.msra.mxu0 %v1208_v37  ;;  %v741_v37 = vshrl.u32 %v740_v36, 7 }
  0x3b   :  { %447 = vmatprep.subr.bf16.mxu0 %v1213_v38 }
  0x3c   :  { %v742_v38 = vsub.s32 0, %v741_v37 }
  0x3d   :  { %380 = vmatmul.mubr.bf16.gmra.mrb[4].mxu0 %v1220_v39  ;;  %433 = vmatmul.mubr.bf16.gmra.mrb[4].mxu1 %v1220_v39 }
  0x3e   :  { %448 = vmatpush1.bf16.msra.mxu0 %v1211_v40  ;;  %475 = vmatprep.mubr.bf16.mxu0 %v1293_v0  ;;  %v746_v40 = vsub.s32 1, %v741_v37 }
  0x3f   :  { %449 = vmatprep.subr.bf16.mxu0 %v1216_v41  ;;  %567 = vmatprep.mubr.bf16.mxu1 %v1293_v0 }
  0x42   :  { %450 = vmatpush1.bf16.msra.mxu0 %v1214_v42 }
  0x43   :  { %451 = vmatprep.subr.bf16.mxu0 %v1219_v43 }
  0x46   :  { %452 = vmatpush1.bf16.msra.mxu0 %v1217_v44 }
  0x47   :  { %453 = vmatprep.subr.bf16.mxu0 %v1223_v45 }
  0x4a   :  { %454 = vmatpush1.bf16.msra.mxu0 %v1221_v46 }
  0x4b   :  { %455 = vmatprep.subr.bf16.mxu0 %v1226_v47 }
  0x4e   :  { %456 = vmatpush1.bf16.msra.mxu0 %v1224_v48 }
  0x4f   :  { %457 = vmatprep.subr.bf16.mxu0 %v1229_v49 }
  0x52   :  { %458 = vmatpush1.bf16.msra.mxu0 %v1227_v50 }
  0x55   :  { %476 = vmatmul.mubr.bf16.vlgmr.msra.gmra.mrb[8].mxu0 %v1204_v34  ;;  %v1240_v34 = vld [vmem:[%s1442_s1 + $0x28] sm:$0xff]   ;;  %s1294_s1 = smov [#allocation5]  }
  0x56   :  { %485 = vmatprep.mubr.bf16.mxu0 %v1293_v0 }
  0x5d   :  { %486 = vmatmul.mubr.bf16.gmra.mrb[12].mxu0 %v1220_v39  ;;  %v508_v39 = vld [vmem:[%s1444_s3] sm:$0x3]  ;;  %s1015_s3 = sshll.u32 %s1294_s1, 4  ;;  %s1016_s3 = int_to_ptr.vmem [resolvable:$true] %s1015_s3 }
  0x5e   :  { %891 = vmatprep.mubr.bf16.mxu0 %v1293_v0  ;;  %v1409_v41 = vrot.slane %v508_v39, %v742_v38  ;;  %v1411_v42 = vrot.slane %v508_v39, %v746_v40  ;;  %s1264_s30 = scalar_lea.vmem %s1016_s3, 2048  ;;  %p1269_p9 = scmp.lt.s32.totalorder %s1016_s3, %s1016_s3 }
  0x5f   :  { %p1265_p8 = scmp.ne.s32.totalorder %s1016_s3, %s1264_s30  ;;  %p1270_p10 = scmp.lt.s32.totalorder %s1264_s30, %s1264_s30 }
  0x61   :  { %p1271_p11 = por %p1270_p10, %p1269_p9 }
  0x63   :  { %p1272_p12 = pnand %p1271_p11, %p1265_p8 }
 0x108   :  { %v371_v51 = vpop.f32.mrb[0].mxu0  ;;  %v424_v52 = vpop.f32.mrb[0].mxu1 }
 0x109   :  { %v373_v53 = vpop.f32.mrb[1].mxu0  ;;  %v426_v54 = vpop.f32.mrb[1].mxu1 }
 0x10a   :  { %v375_v55 = vpop.f32.mrb[2].mxu0  ;;  %v428_v56 = vpop.f32.mrb[2].mxu1 }
 0x10b   :  { %v496_v57 = vpack.c.bf16 %v375_v55, %v371_v51  ;;  %v498_v58 = vpack.c.bf16 %v428_v56, %v424_v52  ;;  %v377_v59 = vpop.f32.mrb[3].mxu0  ;;  %v430_v60 = vpop.f32.mrb[3].mxu1 }
 0x10c   :  { %v497_v61 = vpack.c.bf16 %v377_v59, %v373_v53  ;;  %v499_v62 = vpack.c.bf16 %v430_v60, %v426_v54 }
 0x10e   :  { %535 = vmatprep.subr.bf16.mxu1 %v499_v62 }
 0x10f   :  { %536 = vmatpush1.bf16.msra.mxu1 %v498_v58 }
 0x110   :  { %604 = vmatprep.subr.bf16.mxu1 %v497_v61  ;;  %v381_v1 = vpop.f32.mrb[4].mxu0  ;;  %v434_v2 = vpop.f32.mrb[4].mxu1 }
 0x111   :  { %v383_v3 = vpop.f32.mrb[5].mxu0  ;;  %v436_v4 = vpop.f32.mrb[5].mxu1 }
 0x112   :  { %1083 = vmatmul.mubr.msk.bf16.vlgmr.msra.gmra.mrb[8].mxu1 %vm528_vm0, %v1230_v63  ;;  %v385_v5 = vpop.f32.mrb[6].mxu0  ;;  %v438_v6 = vpop.f32.mrb[6].mxu1 }
 0x113   :  { %605 = vmatpush1.bf16.msra.mxu1 %v496_v57  ;;  %577 = vmatprep.mubr.bf16.mxu1 %v1293_v0  ;;  %v502_v7 = vpack.c.bf16 %v385_v5, %v381_v1  ;;  %v387_v8 = vpop.f32.mrb[7].mxu0  ;;  %v504_v9 = vpack.c.bf16 %v438_v6, %v434_v2  ;;  %v440_v10 = vpop.f32.mrb[7].mxu1 }
 0x114   :  { %v503_v11 = vpack.c.bf16 %v387_v8, %v383_v3  ;;  %v505_v12 = vpack.c.bf16 %v440_v10, %v436_v4 }
 0x116   :  { %859 = vmatprep.subr.bf16.mxu0 %v503_v11 }
 0x117   :  { %860 = vmatpush1.bf16.msra.mxu0 %v502_v7 }
 0x11a   :  { %1084 = vmatmul.mubr.msk.bf16.gmra.mrb[12].mxu1 %vm528_vm0, %v1231_v13  ;;  %1107 = vmatmul.mubr.msk.bf16.vlgmr.msra.gmra.mrb[16].mxu0 %vm528_vm0, %v1234_v14 }
 0x11b   :  { %636 = vmatprep.mubr.bf16.mxu1 %v1293_v0  ;;  %901 = vmatprep.mubr.bf16.mxu0 %v1293_v0 }
 0x122   :  { %1087 = vmatmul.mubr.msk.bf16.vlgmr.msra.gmra.mrb[8].mxu1 %vm528_vm0, %v1232_v15  ;;  %1108 = vmatmul.mubr.msk.bf16.gmra.mrb[20].mxu0 %vm528_vm0, %v1236_v16 }
 0x123   :  { %646 = vmatprep.mubr.bf16.mxu1 %v1293_v0  ;;  %964 = vmatprep.mubr.bf16.mxu0 %v1293_v0 }
 0x128   :  { %v477_v18 = vpop.f32.mrb[8].mxu0 }
 0x129   :  { %v479_v19 = vpop.f32.mrb[9].mxu0 }
 0x12a   :  { %v481_v20 = vpop.f32.mrb[10].mxu0  ;;  %1088 = vmatmul.mubr.msk.bf16.gmra.mrb[12].mxu1 %vm528_vm0, %v1233_v17 }
 0x12b   :  { %v500_v21 = vpack.c.bf16 %v481_v20, %v477_v18  ;;  %v483_v22 = vpop.f32.mrb[11].mxu0  ;;  %710 = vmatprep.mubr.bf16.mxu1 %v1293_v0 }
 0x12c   :  { %v501_v23 = vpack.c.bf16 %v483_v22, %v479_v19 }
 0x12e   :  { %678 = vmatprep.subr.bf16.mxu1 %v501_v23 }
 0x12f   :  { %679 = vmatpush1.bf16.msra.mxu1 %v500_v21 }
 0x130   :  { %v487_v25 = vpop.f32.mrb[12].mxu0  ;;  %790 = vmatprep.subr.bf16.mxu1 %v505_v12 }
 0x131   :  { %v489_v26 = vpop.f32.mrb[13].mxu0 }
 0x132   :  { %1095 = vmatmul.mubr.msk.bf16.vlgmr.msra.gmra.mrb[8].mxu1 %vm528_vm0, %v1235_v24  ;;  %v491_v27 = vpop.f32.mrb[14].mxu0 }
 0x133   :  { %v506_v28 = vpack.c.bf16 %v491_v27, %v487_v25  ;;  %v493_v29 = vpop.f32.mrb[15].mxu0  ;;  %720 = vmatprep.mubr.bf16.mxu1 %v1293_v0  ;;  %791 = vmatpush1.bf16.msra.mxu1 %v504_v9 }
 0x134   :  { %v507_v30 = vpack.c.bf16 %v493_v29, %v489_v26 }
 0x136   :  { %932 = vmatprep.subr.bf16.mxu0 %v507_v30 }
 0x137   :  { %933 = vmatpush1.bf16.msra.mxu0 %v506_v28 }
 0x13a   :  { %1096 = vmatmul.mubr.msk.bf16.gmra.mrb[12].mxu1 %vm528_vm0, %v1237_v31  ;;  %1115 = vmatmul.mubr.msk.bf16.vlgmr.msra.gmra.mrb[16].mxu0 %vm528_vm0, %v1238_v32 }
 0x13b   :  { %822 = vmatprep.mubr.bf16.mxu1 %v1293_v0  ;;  %974 = vmatprep.mubr.bf16.mxu0 %v1293_v0 }
 0x142   :  { %1103 = vmatmul.mubr.msk.bf16.vlgmr.msra.gmra.mrb[16].mxu1 %vm528_vm0, %v1239_v33  ;;  %1116 = vmatmul.mubr.msk.bf16.gmra.mrb[20].mxu0 %vm528_vm0, %v1240_v34 }
 0x143   :  { %832 = vmatprep.mubr.bf16.mxu1 %v1293_v0 }
 0x14a   :  { %1104 = vmatmul.mubr.msk.bf16.gmra.mrb[20].mxu1 %vm528_vm0, %v1241_v35 }
 0x205   :  { %v712_v43 = vpop.f32.mrb[8].mxu1 }
 0x206   :  { %v750_v0 = vadd.f32 %v1409_v41, %v712_v43  ;;  %v714_v44 = vpop.f32.mrb[9].mxu1 }
 0x207   :  { %v751_v45 = vadd.f32 %v1411_v42, %v714_v44  ;;  %v716_v46 = vpop.f32.mrb[10].mxu1 }
 0x208   :  { %758 = vst [vmem:[#allocation5] sm:$0xff] %v750_v0  ;;  %v752_v47 = vadd.f32 %v1409_v41, %v716_v46  ;;  %v718_v48 = vpop.f32.mrb[11].mxu1 }
 0x209   :  { %759 = vst [vmem:[#allocation5 + $0x8] sm:$0xff] %v751_v45  ;;  %v753_v49 = vadd.f32 %v1411_v42, %v718_v48 }
 0x20a   :  { %760 = vst [vmem:[#allocation5 + $0x10] sm:$0xff] %v752_v47 }
 0x20b   :  { %761 = vst [vmem:[#allocation5 + $0x18] sm:$0xff] %v753_v49 }
 0x20d   :  { %v722_v50 = vpop.f32.mrb[12].mxu1  ;;  %v966_v51 = vpop.f32.mrb[16].mxu0 }
 0x20e   :  { %v754_v52 = vadd.f32 %v1409_v41, %v722_v50  ;;  %v724_v53 = vpop.f32.mrb[13].mxu1  ;;  %v968_v54 = vpop.f32.mrb[17].mxu0 }
 0x20f   :  { %v755_v55 = vadd.f32 %v1411_v42, %v724_v53  ;;  %v726_v56 = vpop.f32.mrb[14].mxu1  ;;  %v970_v57 = vpop.f32.mrb[18].mxu0 }
 0x210   :  { %762 = vst [vmem:[#allocation5 + $0x20] sm:$0xff] %v754_v52  ;;  %v756_v58 = vadd.f32 %v1409_v41, %v726_v56  ;;  %v728_v59 = vpop.f32.mrb[15].mxu1  ;;  %v972_v60 = vpop.f32.mrb[19].mxu0 }
 0x211   :  { %763 = vst [vmem:[#allocation5 + $0x28] sm:$0xff] %v755_v55  ;;  %v757_v61 = vadd.f32 %v1411_v42, %v728_v59 }
 0x212   :  { %764 = vst [vmem:[#allocation5 + $0x30] sm:$0xff] %v756_v58 }
 0x213   :  { %765 = vst [vmem:[#allocation5 + $0x38] sm:$0xff] %v757_v61 }
 0x215   :  { %v824_v62 = vpop.f32.mrb[16].mxu1  ;;  %v976_v63 = vpop.f32.mrb[20].mxu0 }
 0x216   :  { %v1117_v1 = vadd.f32 %v966_v51, %v824_v62  ;;  %v826_v2 = vpop.f32.mrb[17].mxu1  ;;  %v978_v3 = vpop.f32.mrb[21].mxu0 }
 0x217   :  { %v1118_v4 = vadd.f32 %v968_v54, %v826_v2  ;;  %v828_v5 = vpop.f32.mrb[18].mxu1  ;;  %v980_v6 = vpop.f32.mrb[22].mxu0 }
 0x218   :  { %v993_v7 = vadd.f32 %v1117_v1, %v1409_v41  ;;  %v1119_v8 = vadd.f32 %v970_v57, %v828_v5  ;;  %v830_v9 = vpop.f32.mrb[19].mxu1  ;;  %v982_v10 = vpop.f32.mrb[23].mxu0 }
 0x219   :  { %v994_v11 = vadd.f32 %v1118_v4, %v1411_v42  ;;  %v1120_v12 = vadd.f32 %v972_v60, %v830_v9 }
 0x21a   :  { %1002 = vst [vmem:[#allocation5 + $0x40] sm:$0xff] %v993_v7  ;;  %v995_v13 = vadd.f32 %v1119_v8, %v1409_v41 }
 0x21b   :  { %1003 = vst [vmem:[#allocation5 + $0x48] sm:$0xff] %v994_v11  ;;  %v996_v14 = vadd.f32 %v1120_v12, %v1411_v42 }
 0x21c   :  { %1004 = vst [vmem:[#allocation5 + $0x50] sm:$0xff] %v995_v13 }
 0x21d   :  { %1005 = vst [vmem:[#allocation5 + $0x58] sm:$0xff] %v996_v14  ;;  %v834_v15 = vpop.f32.mrb[20].mxu1 }
 0x21e   :  { %v1121_v16 = vadd.f32 %v976_v63, %v834_v15  ;;  %v836_v17 = vpop.f32.mrb[21].mxu1 }
 0x21f   :  { %v1122_v18 = vadd.f32 %v978_v3, %v836_v17  ;;  %v838_v19 = vpop.f32.mrb[22].mxu1 }
 0x220   :  { %v997_v20 = vadd.f32 %v1121_v16, %v1409_v41  ;;  %v1123_v21 = vadd.f32 %v980_v6, %v838_v19  ;;  %v840_v22 = vpop.f32.mrb[23].mxu1 }
 0x221   :  { %v998_v23 = vadd.f32 %v1122_v18, %v1411_v42  ;;  %v1124_v24 = vadd.f32 %v982_v10, %v840_v22 }
 0x222   :  { %1006 = vst [vmem:[#allocation5 + $0x60] sm:$0xff] %v997_v20  ;;  %v999_v25 = vadd.f32 %v1123_v21, %v1409_v41 }
 0x223   :  { %1007 = vst [vmem:[#allocation5 + $0x68] sm:$0xff] %v998_v23  ;;  %v1000_v26 = vadd.f32 %v1124_v24, %v1411_v42 }
 0x224   :  { %1008 = vst [vmem:[#allocation5 + $0x70] sm:$0xff] %v999_v25 }
 0x225   :  { %1009 = vst [vmem:[#allocation5 + $0x78] sm:$0xff] %v1000_v26 }
 0x226   :  { %1275 = shalt.err (!%p1272_p12)
}
 0x227   :  { %s1276_s6 = scalar_lea.hbm %s1445_s4, 2048 }
 0x228   :  { %p1277_p13 = scmp.ne.s32.totalorder %s1445_s4, %s1276_s6  ;;  %p1280_p0 = scmp.lt.u32.totalorder %s1276_s6, %s1445_s4 }
 0x22a   :  { %p1282_p1 = pnand %p1280_p0, %p1277_p13 }
 0x22c   :  { %1285 = shalt.err (!%p1282_p1)
}
 0x22d   :  { %s1295_s11 = smov 256   ;;  %s1296_s12 = smov 16  }
 0x22e   :  { %1021 = dma.vmem_to_hbm [thread:$0]  %s1016_s3, 2048, %s1445_s4, [#allocation4], %s1295_s11, %s1295_s11, %s1296_s12  }
 0x22f   :  { %1288 = dma.done.wait [#allocation4], 2048  }
 0x230   :  { %1289 = vsyncadd [#allocation4], 4294965248 }
 0x231   :  { %1025 = vsyncpa [#allocation3], 1 }
 0x232   :  { %1026 = vsyncpa [#allocation4], 1 }

</bundles_post_ra>
